<compile_context>
chip_gen: v7x
topology: tpu7x:2x2x1
jax: 0.10.0
libtpu: 0.0.40
codegen_flags: <defaults>
</compile_context>

<pallas_src>
import functools
import math

import jax
import jax.numpy as jnp
from jax import lax
from jax.experimental import pallas as pl
from jax.experimental.pallas import tpu as pltpu

# ----------------------------- tunables ------------------------------------
MAX_BLOCK_BYTES = 2 * 1024 * 1024      # ~2 MiB per x block in the tiled passes
FUSED_MAX_BYTES = 12 * 1024 * 1024     # x (as f32) <= 12 MiB -> fused single pass
VMEM_LIMIT_BYTES = 32 * 1024 * 1024    # explicit scoped-VMEM limit (safe on v5e/v6e/v7x)
_SUBLANE_MULT = {4: 8, 2: 16, 1: 32}   # second-minor block multiple per itemsize


def _cdiv(a, b):
    return -(-a // b)


# ----------------------- kernel 1: fused small-x path ----------------------
def _fused_train_kernel(rd_ref, x_ref, o_ref, new_rd_ref, *, scale, momentum):
    """Whole x resident in VMEM: L1 sum + threshold + stat update + binarize."""
    x = x_ref[...].astype(jnp.float32)
    d = jnp.sum(jnp.abs(x)) * scale                      # delta_eff
    rd = rd_ref[0, 0]
    new_rd_ref[...] = jnp.reshape(momentum * d + (1.0 - momentum) * rd, (1, 1))
    # NaN-correct binarize: (x >= d) - (x < d)  ->  +1 / -1 / 0 (NaN)
    o_ref[...] = (x >= d).astype(jnp.float32) - (x < d).astype(jnp.float32)


# ------------------- kernel 2: tiled global L1 reduction -------------------
def _l1_partial_kernel(x_ref, part_ref, acc_ref, *, lb, rb, L, R, gl, gl_half):
    c = pl.program_id(0)      # 2-way core-split axis ("parallel", megacore)
    i = pl.program_id(1)      # L-block index within this core's half
    j = pl.program_id(2)      # R-block index

    @pl.when(jnp.logical_and(i == 0, j == 0))
    def _():
        acc_ref[...] = jnp.zeros_like(acc_ref)

    # per-(l, r) row sums over the full minor dim (always in-bounds)
    row_sums = jnp.sum(jnp.abs(x_ref[...].astype(jnp.float32)), axis=2)  # (lb, rb)

    lblk = c * gl_half + i    # logical (unclamped) L-block id
    masks = []
    if (L % lb != 0) or (2 * gl_half != gl):
        il = lax.broadcasted_iota(jnp.int32, row_sums.shape, 0)
        masks.append(lblk * lb + il < L)          # L tail + duplicated last block
    if R % rb != 0:
        ir = lax.broadcasted_iota(jnp.int32, row_sums.shape, 1)
        masks.append(j * rb + ir < R)             # R tail
    if masks:
        valid = masks[0]
        for m in masks[1:]:
            valid = jnp.logical_and(valid, m)
        row_sums = jnp.where(valid, row_sums, jnp.float32(0.0))

    acc_ref[...] = acc_ref[...] + jnp.sum(row_sums)

    @pl.when(jnp.logical_and(i == pl.num_programs(1) - 1,
                             j == pl.num_programs(2) - 1))
    def _():
        # per-core partial, splatted into an (8,128) tile (layout-legal block)
        part_ref[...] = jnp.broadcast_to(acc_ref[...], part_ref.shape)


# ---------------------- kernel 3: tiled elementwise binarize ---------------
def _binarize_kernel(thr_ref, x_ref, o_ref):
    d = thr_ref[0, 0]
    x = x_ref[...].astype(jnp.float32)
    o_ref[...] = (x >= d).astype(jnp.float32) - (x < d).astype(jnp.float32)


# ------------------------------ wrapper utils ------------------------------
def _as_3d(x):
    """Collapse leading dims only (keeps the minor two dims -> no relayout)."""
    if x.ndim == 0:
        return x.reshape(1, 1, 1)
    if x.ndim == 1:
        return x.reshape(1, 1, x.shape[0])
    if x.ndim == 2:
        return x.reshape(1, x.shape[0], x.shape[1])
    lead = math.prod(x.shape[:-2])
    return x.reshape(lead, x.shape[-2], x.shape[-1])


def _choose_blocks(L, R, C, itemsize, block_bytes):
    """Pick (lb, rb): block = (lb, rb, C); last two block dims always legal."""
    sub = _SUBLANE_MULT.get(itemsize, 8)
    slab = R * C * itemsize                       # one full (1, R, C) slab
    if slab <= block_bytes:
        lb = max(1, min(L, block_bytes // slab))
        rb = R                                    # full second-minor dim
    else:
        lb = 1
        rb = max(sub, (block_bytes // (C * itemsize)) // sub * sub)
        rb = min(rb, R)
        # TODO(synk): also block the minor dim when a single (1, sub, C) strip
        #             still exceeds the budget (needs C % 128 == 0).
    return lb, rb


def _fused_train(x, rd_arr, scale, momentum):
    kernel = functools.partial(_fused_train_kernel, scale=scale, momentum=momentum)
    return pl.pallas_call(
        kernel,
        out_shape=(jax.ShapeDtypeStruct(x.shape, jnp.float32),
                   jax.ShapeDtypeStruct((1, 1), jnp.float32)),
        in_specs=[pl.BlockSpec(memory_space=pltpu.MemorySpace.SMEM),
                  pl.BlockSpec(memory_space=pltpu.MemorySpace.VMEM)],
        out_specs=(pl.BlockSpec(memory_space=pltpu.MemorySpace.VMEM),
                   pl.BlockSpec(memory_space=pltpu.MemorySpace.VMEM)),
        compiler_params=pltpu.CompilerParams(vmem_limit_bytes=VMEM_LIMIT_BYTES),
    )(rd_arr, x)


def _l1_tiled(x3d, lb, rb):
    L, R, C = (int(s) for s in x3d.shape)
    gl, gr = _cdiv(L, lb), _cdiv(R, rb)
    gl_half = _cdiv(gl, 2)

    kernel = functools.partial(_l1_partial_kernel, lb=lb, rb=rb, L=L, R=R,
                               gl=gl, gl_half=gl_half)

    def x_map(c, i, j):
        # clamp the (possibly duplicated) last block; its contribution is masked
        return (jnp.minimum(c * gl_half + i, gl - 1), j, 0)

    parts = pl.pallas_call(
        kernel,
        out_shape=jax.ShapeDtypeStruct((16, 128), jnp.float32),
        grid_spec=pltpu.PrefetchScalarGridSpec(
            num_scalar_prefetch=0,
            grid=(2, gl_half, gr),
            in_specs=[pl.BlockSpec((lb, rb, C), x_map)],
            out_specs=pl.BlockSpec((8, 128), lambda c, i, j: (c, 0)),
            scratch_shapes=[pltpu.VMEM((1, 1), jnp.float32)],
        ),
        compiler_params=pltpu.CompilerParams(
            dimension_semantics=("parallel", "arbitrary", "arbitrary"),
            vmem_limit_bytes=VMEM_LIMIT_BYTES),
    )(x3d)
    return parts[0, 0] + parts[8, 0]


def _binarize_tiled(x3d, thr, lb, rb):
    L, R, C = (int(s) for s in x3d.shape)
    gl, gr = _cdiv(L, lb), _cdiv(R, rb)
    thr_arr = jnp.reshape(thr, (1, 1)).astype(jnp.float32)
    return pl.pallas_call(
        _binarize_kernel,
        out_shape=jax.ShapeDtypeStruct((L, R, C), jnp.float32),
        grid_spec=pltpu.PrefetchScalarGridSpec(
            num_scalar_prefetch=0,
            grid=(gl, gr),
            in_specs=[
                pl.BlockSpec(memory_space=pltpu.MemorySpace.SMEM),   # threshold
                pl.BlockSpec((lb, rb, C), lambda i, j: (i, j, 0)),
            ],
            out_specs=pl.BlockSpec((lb, rb, C), lambda i, j: (i, j, 0)),
        ),
        compiler_params=pltpu.CompilerParams(
            dimension_semantics=("parallel", "parallel"),
            vmem_limit_bytes=VMEM_LIMIT_BYTES),
    )(thr_arr, x3d)


# ------------------------------- public API --------------------------------
def binary_forward(x, running_delta, *, delta=0.5, momentum=0.01, training=True,
                   block_bytes=MAX_BLOCK_BYTES, fused_max_bytes=FUSED_MAX_BYTES):
    """Forward pass of the Binary module.

    Returns (binarized_output float32, new_running_delta float32 like input).
    """
    orig_shape = x.shape
    numel = int(x.size)
    rd = jnp.asarray(running_delta, jnp.float32)

    if momentum > 0 and training:
        scale = float(delta) / float(numel)
        if numel * 4 <= fused_max_bytes and x.ndim >= 1:
            # ---- small/medium x: fused single pass (1 read + 1 write of x) ----
            out, new_rd_arr = _fused_train(x, jnp.reshape(rd, (1, 1)), scale, momentum)
            return out, jnp.reshape(new_rd_arr, rd.shape)

        # ---- large x: tiled L1 reduction (2-core split) + tiled binarize ----
        x3d = _as_3d(x)
        L, R, C = (int(s) for s in x3d.shape)
        lb, rb = _choose_blocks(L, R, C, x3d.dtype.itemsize, block_bytes)
        l1 = _l1_tiled(x3d, lb, rb)
        delta_eff = l1 * scale
        new_rd = (momentum * delta_eff + (1.0 - momentum) * rd).astype(jnp.float32)
        out3d = _binarize_tiled(x3d, delta_eff, lb, rb)
        return out3d.reshape(orig_shape), new_rd

    # ---- no reduction: threshold is already known, running stat unchanged ----
    if momentum > 0:
        thr = jnp.reshape(rd, (-1,))[0]          # eval: use running_delta
    else:
        thr = jnp.float32(delta)                 # momentum <= 0: fixed delta
    x3d = _as_3d(x)
    L, R, C = (int(s) for s in x3d.shape)
    lb, rb = _choose_blocks(L, R, C, x3d.dtype.itemsize, block_bytes)
    out3d = _binarize_tiled(x3d, thr, lb, rb)
    return out3d.reshape(orig_shape), rd


# ---------------------------------- tests -----------------------------------
if __name__ == "__main__":
    DELTA = 0.5
    MOMENTUM = 0.01
    # buffer init from Binary.reset_parameters (momentum > 0 branch)
    running_delta = jnp.full((1,), DELTA * 0.7979, dtype=jnp.float32)

    def _check(x, out, d_ref):
        ref = jnp.where(x >= d_ref, 1.0, -1.0).astype(jnp.float32)
        # tolerate sign flips only for elements at the threshold (ulp-level
        # differences in reduction order vs jnp.sum)
        boundary = jnp.abs(x - d_ref) <= 1e-6 * jnp.maximum(jnp.abs(d_ref), 1.0)
        assert out.shape == x.shape and out.dtype == jnp.float32
        assert bool(jnp.all((out == ref) | boundary))

    # ---- 1. training, small x -> fused single-pass kernel -------------------
    x = jax.random.normal(jax.random.PRNGKey(0), (2, 4, 16, 16), dtype=jnp.float32)
    out, new_rd = binary_forward(x, running_delta, delta=DELTA,
                                 momentum=MOMENTUM, training=True)
    out, new_rd = jax.block_until_ready((out, new_rd))
    d_ref = jnp.sum(jnp.abs(x)) * (DELTA / x.size)
    _check(x, out, d_ref)
    assert jnp.allclose(new_rd, MOMENTUM * d_ref + (1.0 - MOMENTUM) * running_delta,
                        rtol=1e-5, atol=1e-6)

    # ---- 2. training, tiled path with odd L-block count (tail + core split) --
    x2 = jax.random.normal(jax.random.PRNGKey(1), (2, 4, 30, 30), dtype=jnp.float32)
    out2, rd2 = binary_forward(x2, running_delta, delta=DELTA,
                               momentum=MOMENTUM, training=True,
                               block_bytes=3 * 30 * 30 * 4, fused_max_bytes=0)
    out2, rd2 = jax.block_until_ready((out2, rd2))
    d2 = jnp.sum(jnp.abs(x2)) * (DELTA / x2.size)
    _check(x2, out2, d2)
    assert jnp.allclose(rd2, MOMENTUM * d2 + (1.0 - MOMENTUM) * running_delta,
                        rtol=1e-5, atol=1e-6)

    # ---- 3. training, tiled path with R-dim blocking + R tail mask ----------
    x3 = jax.random.normal(jax.random.PRNGKey(2), (2, 50, 40), dtype=jnp.float32)
    out3, rd3 = binary_forward(x3, running_delta, delta=DELTA,
                               momentum=MOMENTUM, training=True,
                               block_bytes=2000, fused_max_bytes=0)
    out3, rd3 = jax.block_until_ready((out3, rd3))
    d3 = jnp.sum(jnp.abs(x3)) * (DELTA / x3.size)
    _check(x3, out3, d3)
    assert jnp.allclose(rd3, MOMENTUM * d3 + (1.0 - MOMENTUM) * running_delta,
                        rtol=1e-5, atol=1e-6)

    # ---- 4. eval path: threshold from running_delta, stat unchanged ---------
    out_e, rd_e = binary_forward(x, running_delta, delta=DELTA,
                                 momentum=MOMENTUM, training=False)
    out_e, rd_e = jax.block_until_ready((out_e, rd_e))
    ref_e = jnp.where(x >= running_delta[0], 1.0, -1.0).astype(jnp.float32)
    assert jnp.array_equal(out_e, ref_e)
    assert jnp.array_equal(rd_e, running_delta)

    # ---- 5. momentum <= 0 path: fixed delta threshold -----------------------
    out_m, rd_m = binary_forward(x, running_delta, delta=DELTA,
                                 momentum=0.0, training=True)
    out_m, rd_m = jax.block_until_ready((out_m, rd_m))
    ref_m = jnp.where(x >= DELTA, 1.0, -1.0).astype(jnp.float32)
    assert jnp.array_equal(out_m, ref_m)
    assert jnp.array_equal(rd_m, running_delta)

    print("KERNEL_OK")
</pallas_src>

<mosaic_0001>
module attributes {stable_mosaic.version = 11 : i64} {
  func.func @_fused_train_kernel(%arg0: memref<1x1xf32, #tpu.memory_space<smem>>, %arg1: memref<2x4x16x16xf32, #tpu.memory_space<vmem>>, %arg2: memref<2x4x16x16xf32, #tpu.memory_space<vmem>>, %arg3: memref<1x1xf32, #tpu.memory_space<vmem>>) attributes {dimension_semantics = [], scalar_prefetch = 0 : i64, scratch_operands = 0 : i64, tpu.core_type = #tpu.core_type<tc>} {
    %c0 = arith.constant 0 : index
    %c0_0 = arith.constant 0 : index
    %c0_1 = arith.constant 0 : index
    %c0_2 = arith.constant 0 : index
    %0 = vector.load %arg1[%c0, %c0_0, %c0_1, %c0_2] : memref<2x4x16x16xf32, #tpu.memory_space<vmem>>, vector<2x4x16x16xf32>
    %1 = math.absf %0 : vector<2x4x16x16xf32>
    %2 = vector.shape_cast %1 : vector<2x4x16x16xf32> to vector<1x2x4x16x16xf32>
    %cst = arith.constant dense<0.000000e+00> : vector<1xf32>
    %3 = vector.multi_reduction <add>, %2, %cst [1, 2, 3, 4] : vector<1x2x4x16x16xf32> to vector<1xf32>
    %4 = vector.shape_cast %3 : vector<1xf32> to vector<1x1x1x1x1xf32>
    %5 = vector.extract %4[0, 0, 0, 0, 0] : f32 from vector<1x1x1x1x1xf32>
    %cst_3 = arith.constant 2.44140625E-4 : f32
    %6 = arith.mulf %5, %cst_3 : f32
    %c0_4 = arith.constant 0 : index
    %c0_5 = arith.constant 0 : index
    %7 = memref.load %arg0[%c0_4, %c0_5] : memref<1x1xf32, #tpu.memory_space<smem>>
    %cst_6 = arith.constant 0.00999999977 : f32
    %8 = arith.mulf %cst_6, %6 : f32
    %cst_7 = arith.constant 9.900000e-01 : f32
    %9 = arith.mulf %cst_7, %7 : f32
    %10 = arith.addf %8, %9 : f32
    %11 = vector.broadcast %10 : f32 to vector<1x1xf32>
    %c0_8 = arith.constant 0 : index
    %c0_9 = arith.constant 0 : index
    %12 = vector.load %arg3[%c0_8, %c0_9] : memref<1x1xf32, #tpu.memory_space<vmem>>, vector<1x1xf32>
    tpu.vector_store %arg3[%c0_8, %c0_9], %11 {strides = array<i32>} : memref<1x1xf32, #tpu.memory_space<vmem>>, vector<1x1xf32>,
    %13 = vector.broadcast %6 : f32 to vector<2x4x16x16xf32>
    %14 = arith.cmpf oge, %0, %13 : vector<2x4x16x16xf32>
    %15 = arith.extui %14 : vector<2x4x16x16xi1> to vector<2x4x16x16xi32>
    %16 = arith.sitofp %15 : vector<2x4x16x16xi32> to vector<2x4x16x16xf32>
    %17 = vector.broadcast %6 : f32 to vector<2x4x16x16xf32>
    %18 = arith.cmpf olt, %0, %17 : vector<2x4x16x16xf32>
    %19 = arith.extui %18 : vector<2x4x16x16xi1> to vector<2x4x16x16xi32>
    %20 = arith.sitofp %19 : vector<2x4x16x16xi32> to vector<2x4x16x16xf32>
    %21 = arith.subf %16, %20 : vector<2x4x16x16xf32>
    %c0_10 = arith.constant 0 : index
    %c0_11 = arith.constant 0 : index
    %c0_12 = arith.constant 0 : index
    %c0_13 = arith.constant 0 : index
    %22 = vector.load %arg2[%c0_10, %c0_11, %c0_12, %c0_13] : memref<2x4x16x16xf32, #tpu.memory_space<vmem>>, vector<2x4x16x16xf32>
    tpu.vector_store %arg2[%c0_10, %c0_11, %c0_12, %c0_13], %21 {strides = array<i32>} : memref<2x4x16x16xf32, #tpu.memory_space<vmem>>, vector<2x4x16x16xf32>,
    return
  }
}

</mosaic_0001>

<bundles_post_ra>
// kernel: tpu_custom_call.1
= control target key start
LH: loop header
LB: loop body
LE: loop exit
PB: predicated region body
PF: predicated region fallthrough
CT: control target
= control target key end

     0   :  { %10 = vsyncpa [#allocation4], 0  ;;  %s715_s0 = inlined_call_operand.<no memory space> [shape: f32[1,1], index: 0, kind: input, shape index: {}]   ;;  %s716_s1 = inlined_call_operand.hbm [shape: f32[2,4,16,16], index: 1, kind: input, shape index: {}]   ;;  %s717_s2 = inlined_call_operand.hbm [shape: f32[2,4,16,16], index: 2, kind: output, shape index: {0}]   ;;  %s718_s3 = inlined_call_operand.hbm [shape: f32[1,1], index: 3, kind: output, shape index: {1}]  }
   0x1   :  { %11 = vsyncpa [#allocation5], 0 }
   0x2   :  { %12 = vsyncpa [#allocation8], 0  ;;  %s383_s12 = smov [#allocation3]   ;;  %s311_s16 = scalar_lea.hbm %s716_s1, 2048 }
   0x3   :  { %s20_s13 = sshll.u32 %s383_s12, 4  ;;  %p312_p0 = scmp.ne.s32.totalorder %s716_s1, %s311_s16  ;;  %s21_s13 = int_to_ptr.vmem [resolvable:$true] %s20_s13 }
   0x4   :  { %p315_p1 = scmp.lt.u32.totalorder %s311_s16, %s716_s1 }
   0x6   :  { %p317_p2 = pnand %p315_p1, %p312_p0 }
   0x8   :  { %320 = shalt.err (!%p317_p2)
}
   0x9   :  { %s321_s21 = scalar_lea.vmem %s21_s13, 2048  ;;  %p326_p4 = scmp.lt.s32.totalorder %s21_s13, %s21_s13 }
   0xa   :  { %p322_p3 = scmp.ne.s32.totalorder %s21_s13, %s321_s21  ;;  %p327_p5 = scmp.lt.s32.totalorder %s321_s21, %s321_s21 }
   0xc   :  { %p328_p6 = por %p327_p5, %p326_p4 }
   0xe   :  { %p329_p7 = pnand %p328_p6, %p322_p3 }
  0x10   :  { %332 = shalt.err (!%p329_p7)
}
  0x11   :  { %s384_s22 = smov 128   ;;  %s385_s23 = smov 8  }
  0x12   :  { %26 = dma.hbm_to_vmem [thread:$0]  %s716_s1, 2048, %s21_s13, [#allocation4], %s384_s22, %s384_s22, %s385_s23  }
  0x13   :  { %377 = dma.done.wait [#allocation4], 2048  }
  0x14   :  { %378 = vsyncadd [#allocation4], 4294965248  ;;  %v424_v0 = vld [vmem:[#allocation3] sm:$0xff]  ;;  %v426_v1 = vld [vmem:[#allocation3 + $0x8] sm:$0xff]  ;;  %vm719_vm0 = vcmask 130048   ;;  %s387_s4 = smov [#allocation6]  }
  0x15   :  { %v428_v2 = vld [vmem:[#allocation3 + $0x10] sm:$0xff]  ;;  %v46_v3 = vand.u32 2147483647, %v424_v0  ;;  %v431_v4 = vld [vmem:[#allocation3 + $0x18] sm:$0xff]  ;;  %v433_v5 = vld [vmem:[#allocation3 + $0x20] sm:$0xff]  ;;  %s245_s5 = sshll.u32 %s387_s4, 4  ;;  %s246_s5 = int_to_ptr.vmem [resolvable:$true] %s245_s5 }
  0x16   :  { %v47_v6 = vand.u32 2147483647, %v426_v1  ;;  %v48_v7 = vand.u32 2147483647, %v428_v2  ;;  %v438_v9 = vld [vmem:[#allocation3 + $0x28] sm:$0xff]  ;;  %v444_v15 = vld [vmem:[#allocation3 + $0x30] sm:$0xff]  ;;  %p338_p9 = scmp.lt.s32.totalorder %s246_s5, %s246_s5 }
  0x17   :  { %v63_v8 = vsel %vm719_vm0, %v46_v3, 0.0  ;;  %v49_v11 = vand.u32 2147483647, %v431_v4  ;;  %v50_v12 = vand.u32 2147483647, %v433_v5  ;;  %v447_v18 = vld [vmem:[#allocation3 + $0x38] sm:$0xff] }
  0x18   :  { %v64_v10 = vsel %vm719_vm0, %v47_v6, 0.0  ;;  %v66_v14 = vsel %vm719_vm0, %v48_v7, 0.0  ;;  %v51_v16 = vand.u32 2147483647, %v438_v9  ;;  %v52_v19 = vand.u32 2147483647, %v444_v15 }
  0x19   :  { %v65_v13 = vadd.f32 %v64_v10, %v63_v8  ;;  %v68_v20 = vsel %vm719_vm0, %v49_v11, 0.0  ;;  %v70_v21 = vsel %vm719_vm0, %v50_v12, 0.0  ;;  %v452_v22 = vld [vmem:[#allocation3 + $0x40] sm:$0xff]  ;;  %v53_v24 = vand.u32 2147483647, %v447_v18  ;;  %v456_v26 = vld [vmem:[#allocation3 + $0x48] sm:$0xff] }
  0x1a   :  { %v72_v25 = vsel %vm719_vm0, %v51_v16, 0.0  ;;  %v54_v28 = vand.u32 2147483647, %v452_v22  ;;  %v74_v29 = vsel %vm719_vm0, %v52_v19, 0.0  ;;  %v460_v30 = vld [vmem:[#allocation3 + $0x50] sm:$0xff]  ;;  %v464_v34 = vld [vmem:[#allocation3 + $0x58] sm:$0xff] }
  0x1b   :  { %v67_v17 = vadd.f32 %v66_v14, %v65_v13  ;;  %v55_v32 = vand.u32 2147483647, %v456_v26  ;;  %v76_v33 = vsel %vm719_vm0, %v53_v24, 0.0  ;;  %v56_v36 = vand.u32 2147483647, %v460_v30  ;;  %v468_v38 = vld [vmem:[#allocation3 + $0x60] sm:$0xff] }
  0x1c   :  { %v78_v37 = vsel %vm719_vm0, %v54_v28, 0.0  ;;  %v57_v40 = vand.u32 2147483647, %v464_v34  ;;  %v472_v42 = vld [vmem:[#allocation3 + $0x68] sm:$0xff]  ;;  %v58_v44 = vand.u32 2147483647, %v468_v38 }
  0x1d   :  { %v69_v23 = vadd.f32 %v68_v20, %v67_v17  ;;  %v80_v41 = vsel %vm719_vm0, %v55_v32, 0.0  ;;  %v82_v45 = vsel %vm719_vm0, %v56_v36, 0.0  ;;  %v476_v46 = vld [vmem:[#allocation3 + $0x70] sm:$0xff]  ;;  %v59_v48 = vand.u32 2147483647, %v472_v42  ;;  %v480_v50 = vld [vmem:[#allocation3 + $0x78] sm:$0xff] }
  0x1e   :  { %v84_v49 = vsel %vm719_vm0, %v57_v40, 0.0  ;;  %v60_v52 = vand.u32 2147483647, %v476_v46  ;;  %v86_v53 = vsel %vm719_vm0, %v58_v44, 0.0  ;;  %v61_v55 = vand.u32 2147483647, %v480_v50 }
  0x1f   :  { %v71_v27 = vadd.f32 %v70_v21, %v69_v23  ;;  %v88_v56 = vsel %vm719_vm0, %v59_v48, 0.0  ;;  %v386_v13 = vmov 0.0   ;;  %s106_s29 = smul.f32 0.99, %s715_s0  ;;  %s388_s6 = smov [#allocation7]  }
  0x20   :  { %v90_v58 = vsel %vm719_vm0, %v60_v52, 0.0  ;;  %v92_v60 = vsel %vm719_vm0, %v61_v55, 0.0  ;;  %s258_s7 = sshll.u32 %s388_s6, 4  ;;  %s333_s8 = scalar_lea.vmem %s246_s5, 2048  ;;  %s675_s7 = int_to_ptr.vmem [resolvable:$true] %s258_s7 }
  0x21   :  { %v73_v31 = vadd.f32 %v72_v25, %v71_v27  ;;  %p334_p8 = scmp.ne.s32.totalorder %s246_s5, %s333_s8  ;;  %p339_p10 = scmp.lt.s32.totalorder %s333_s8, %s333_s8 }
  0x23   :  { %v75_v35 = vadd.f32 %v74_v29, %v73_v31  ;;  %p340_p11 = por %p339_p10, %p338_p9 }
  0x25   :  { %v77_v39 = vadd.f32 %v76_v33, %v75_v35  ;;  %p341_p12 = pnand %p340_p11, %p334_p8 }
  0x27   :  { %v79_v43 = vadd.f32 %v78_v37, %v77_v39 }
  0x29   :  { %v81_v47 = vadd.f32 %v80_v41, %v79_v43 }
  0x2b   :  { %v83_v51 = vadd.f32 %v82_v45, %v81_v47 }
  0x2d   :  { %v85_v54 = vadd.f32 %v84_v49, %v83_v51 }
  0x2f   :  { %v87_v57 = vadd.f32 %v86_v53, %v85_v54 }
  0x31   :  { %v89_v59 = vadd.f32 %v88_v56, %v87_v57 }
  0x33   :  { %v91_v61 = vadd.f32 %v90_v58, %v89_v59 }
  0x35   :  { %v93_v62 = vadd.f32 %v92_v60, %v91_v61 }
  0x37   :  { %94 = vadd.xlane.f32.xlu0 %v93_v62 }
  0xc4   :  { %v95_v63 = vpop.xlane.xlu0 %94 }
  0xc5   :  { %v96_v3 = vrot.slane %v95_v63, 4 }
  0xc7   :  { %v97_v6 = vadd.f32 %v96_v3, %v95_v63 }
  0xc9   :  { %v98_v7 = vrot.slane %v97_v6, 2 }
  0xcb   :  { %v99_v8 = vadd.f32 %v98_v7, %v97_v6 }
  0xcd   :  { %v100_v10 = vrot.slane %v99_v8, 1 }
  0xcf   :  { %v101_v11 = vadd.f32 %v100_v10, %v99_v8 }
  0xd1   :  { %303 = vpush %v101_v11 }
 0x102   :  { %s488_s1 = spop %303 }
 0x103   :  { %s103_s26 = smul.f32 0.00024414063, %s488_s1 }
 0x105   :  { %v493_v12 = vstv %s103_s26  ;;  %s105_s30 = smul.f32 0.01, %s103_s26 }
 0x106   :  { %vm112_vm1 = vcmp.ge.f32.partialorder %v424_v0, %v493_v12  ;;  %vm113_vm2 = vcmp.ge.f32.partialorder %v426_v1, %v493_v12  ;;  %vm114_vm3 = vcmp.ge.f32.partialorder %v428_v2, %v493_v12  ;;  %vm115_vm4 = vcmp.ge.f32.partialorder %v431_v4, %v493_v12 }
 0x107   :  { %vm116_vm5 = vcmp.ge.f32.partialorder %v433_v5, %v493_v12  ;;  %vm117_vm6 = vcmp.ge.f32.partialorder %v438_v9, %v493_v12  ;;  %vm118_vm7 = vcmp.ge.f32.partialorder %v444_v15, %v493_v12  ;;  %vm119_vm8 = vcmp.ge.f32.partialorder %v447_v18, %v493_v12  ;;  %s660_s0 = sadd.f32 %s106_s29, %s105_s30 }
 0x108   :  { %vm120_vm9 = vcmp.ge.f32.partialorder %v452_v22, %v493_v12  ;;  %vm169_vm12 = vcmp.lt.f32.partialorder %v456_v26, %v493_v12  ;;  %vm170_vm13 = vcmp.lt.f32.partialorder %v460_v30, %v493_v12  ;;  %vm171_vm14 = vcmp.lt.f32.partialorder %v464_v34, %v493_v12 }
 0x109   :  { %vm172_vm15 = vcmp.lt.f32.partialorder %v468_v38, %v493_v12  ;;  %vm173_vm0 = vcmp.lt.f32.partialorder %v472_v42, %v493_v12  ;;  %vm174_vm10 = vcmp.lt.f32.partialorder %v476_v46, %v493_v12  ;;  %vm175_vm11 = vcmp.lt.f32.partialorder %v480_v50, %v493_v12 }
 0x10a   :  { %v271_v14 = vsel %vm112_vm1, 1.0, %v386_v13  ;;  %v272_v16 = vsel %vm113_vm2, 1.0, %v386_v13  ;;  %v273_v17 = vsel %vm114_vm3, 1.0, %v386_v13  ;;  %v274_v19 = vsel %vm115_vm4, 1.0, %v386_v13 }
 0x10b   :  { %v275_v20 = vsel %vm116_vm5, 1.0, %v386_v13  ;;  %v276_v21 = vsel %vm117_vm6, 1.0, %v386_v13  ;;  %v277_v23 = vsel %vm118_vm7, 1.0, %v386_v13  ;;  %v278_v24 = vsel %vm119_vm8, 1.0, %v386_v13 }
 0x10c   :  { %v279_v25 = vsel %vm120_vm9, 1.0, %v386_v13  ;;  %vm720_vm1 = vcmp.ge.f32.partialorder %v456_v26, %v493_v12  ;;  %vm721_vm2 = vcmp.ge.f32.partialorder %v460_v30, %v493_v12  ;;  %vm722_vm3 = vcmp.ge.f32.partialorder %v464_v34, %v493_v12 }
 0x10d   :  { %v280_v27 = vsel %vm720_vm1, 1.0, %v386_v13  ;;  %v281_v28 = vsel %vm721_vm2, 1.0, %v386_v13  ;;  %v282_v29 = vsel %vm722_vm3, 1.0, %v386_v13  ;;  %vm109_vm4 = vcmask 0  }
 0x10e   :  { %vm723_vm5 = vcmp.ge.f32.partialorder %v468_v38, %v493_v12  ;;  %vm724_vm6 = vcmp.ge.f32.partialorder %v472_v42, %v493_v12  ;;  %vm725_vm7 = vcmp.ge.f32.partialorder %v476_v46, %v493_v12  ;;  %vm726_vm8 = vcmp.ge.f32.partialorder %v480_v50, %v493_v12 }
 0x10f   :  { %v283_v31 = vsel %vm723_vm5, 1.0, %v386_v13  ;;  %v284_v32 = vsel %vm724_vm6, 1.0, %v386_v13  ;;  %v285_v33 = vsel %vm725_vm7, 1.0, %v386_v13  ;;  %v286_v35 = vsel %vm726_vm8, 1.0, %v386_v13 }
 0x110   :  { %vm727_vm9 = vcmp.lt.f32.partialorder %v424_v0, %v493_v12  ;;  %vm728_vm1 = vcmp.lt.f32.partialorder %v426_v1, %v493_v12  ;;  %vm729_vm2 = vcmp.lt.f32.partialorder %v428_v2, %v493_v12  ;;  %vm730_vm3 = vcmp.lt.f32.partialorder %v431_v4, %v493_v12 }
 0x111   :  { %v287_v36 = vsel %vm727_vm9, 1.0, %v386_v13  ;;  %v288_v37 = vsel %vm728_vm1, 1.0, %v386_v13  ;;  %v289_v39 = vsel %vm729_vm2, 1.0, %v386_v13  ;;  %v290_v40 = vsel %vm730_vm3, 1.0, %v386_v13 }
 0x112   :  { %vm731_vm5 = vcmp.lt.f32.partialorder %v433_v5, %v493_v12  ;;  %vm732_vm6 = vcmp.lt.f32.partialorder %v438_v9, %v493_v12  ;;  %vm733_vm7 = vcmp.lt.f32.partialorder %v444_v15, %v493_v12  ;;  %vm734_vm8 = vcmp.lt.f32.partialorder %v447_v18, %v493_v12 }
 0x113   :  { %v291_v41 = vsel %vm731_vm5, 1.0, %v386_v13  ;;  %v292_v0 = vsel %vm732_vm6, 1.0, %v386_v13  ;;  %v293_v1 = vsel %vm733_vm7, 1.0, %v386_v13  ;;  %v294_v2 = vsel %vm734_vm8, 1.0, %v386_v13 }
 0x114   :  { %vm735_vm9 = vcmp.lt.f32.partialorder %v452_v22, %v493_v12  ;;  %v296_v5 = vsel %vm169_vm12, 1.0, %v386_v13  ;;  %v297_v9 = vsel %vm170_vm13, 1.0, %v386_v13  ;;  %v298_v15 = vsel %vm171_vm14, 1.0, %v386_v13 }
 0x115   :  { %v295_v4 = vsel %vm735_vm9, 1.0, %v386_v13  ;;  %v299_v18 = vsel %vm172_vm15, 1.0, %v386_v13  ;;  %v300_v22 = vsel %vm173_vm0, 1.0, %v386_v13  ;;  %v301_v26 = vsel %vm174_vm10, 1.0, %v386_v13 }
 0x116   :  { %v302_v30 = vsel %vm175_vm11, 1.0, %v386_v13  ;;  %v208_v34 = vsub.f32 %v271_v14, %v287_v36  ;;  %v209_v43 = vsub.f32 %v272_v16, %v288_v37  ;;  %v210_v44 = vsub.f32 %v273_v17, %v289_v39 }
 0x117   :  { %v211_v45 = vsub.f32 %v274_v19, %v290_v40  ;;  %v212_v38 = vsub.f32 %v275_v20, %v291_v41  ;;  %v213_v47 = vsub.f32 %v276_v21, %v292_v0  ;;  %v214_v42 = vsub.f32 %v277_v23, %v293_v1 }
 0x118   :  { %v215_v48 = vsub.f32 %v278_v24, %v294_v2  ;;  %v216_v46 = vsub.f32 %v279_v25, %v295_v4  ;;  %v217_v49 = vsub.f32 %v280_v27, %v296_v5  ;;  %v218_v51 = vsub.f32 %v281_v28, %v297_v9 }
 0x119   :  { %v219_v52 = vsub.f32 %v282_v29, %v298_v15  ;;  %vm736_vm0 = vcmask 130048   ;;  %v220_v50 = vsub.f32 %v283_v31, %v299_v18  ;;  %v221_v53 = vsub.f32 %v284_v32, %v300_v22 }
 0x11a   :  { %224 = vst.msk [vmem:[#allocation6] sm:$0xff] %vm736_vm0, %v208_v34  ;;  %vm737_vm10 = vmmov %vm736_vm0  ;;  %v222_v54 = vsub.f32 %v285_v33, %v301_v26  ;;  %v223_v55 = vsub.f32 %v286_v35, %v302_v30  ;;  %v108_v56 = vstv %s660_s0 }
 0x11b   :  { %225 = vst.msk [vmem:[#allocation6 + $0x8] sm:$0xff] %vm737_vm10, %v209_v43  ;;  %vm738_vm11 = vmmov %vm736_vm0 }
 0x11c   :  { %226 = vst.msk [vmem:[#allocation6 + $0x10] sm:$0xff] %vm738_vm11, %v210_v44  ;;  %vm739_vm12 = vmmov %vm736_vm0 }
 0x11d   :  { %227 = vst.msk [vmem:[#allocation6 + $0x18] sm:$0xff] %vm739_vm12, %v211_v45  ;;  %vm740_vm13 = vmmov %vm736_vm0 }
 0x11e   :  { %228 = vst.msk [vmem:[#allocation6 + $0x20] sm:$0xff] %vm740_vm13, %v212_v38  ;;  %vm741_vm14 = vmmov %vm736_vm0 }
 0x11f   :  { %229 = vst.msk [vmem:[#allocation6 + $0x28] sm:$0xff] %vm741_vm14, %v213_v47  ;;  %vm742_vm15 = vmmov %vm736_vm0 }
 0x120   :  { %230 = vst.msk [vmem:[#allocation6 + $0x30] sm:$0xff] %vm742_vm15, %v214_v42  ;;  %vm743_vm1 = vmmov %vm736_vm0 }
 0x121   :  { %231 = vst.msk [vmem:[#allocation6 + $0x38] sm:$0xff] %vm743_vm1, %v215_v48  ;;  %vm744_vm2 = vmmov %vm736_vm0 }
 0x122   :  { %232 = vst.msk [vmem:[#allocation6 + $0x40] sm:$0xff] %vm744_vm2, %v216_v46  ;;  %vm745_vm3 = vmmov %vm736_vm0 }
 0x123   :  { %233 = vst.msk [vmem:[#allocation6 + $0x48] sm:$0xff] %vm745_vm3, %v217_v49  ;;  %vm746_vm5 = vmmov %vm736_vm0 }
 0x124   :  { %234 = vst.msk [vmem:[#allocation6 + $0x50] sm:$0xff] %vm746_vm5, %v218_v51  ;;  %vm747_vm6 = vmmov %vm736_vm0 }
 0x125   :  { %235 = vst.msk [vmem:[#allocation6 + $0x58] sm:$0xff] %vm747_vm6, %v219_v52  ;;  %vm748_vm7 = vmmov %vm736_vm0 }
 0x126   :  { %236 = vst.msk [vmem:[#allocation6 + $0x60] sm:$0xff] %vm748_vm7, %v220_v50  ;;  %vm749_vm8 = vmmov %vm736_vm0 }
 0x127   :  { %237 = vst.msk [vmem:[#allocation6 + $0x68] sm:$0xff] %vm749_vm8, %v221_v53  ;;  %vm750_vm9 = vmmov %vm736_vm0 }
 0x128   :  { %238 = vst.msk [vmem:[#allocation6 + $0x70] sm:$0xff] %vm750_vm9, %v222_v54 }
 0x129   :  { %239 = vst.msk [vmem:[#allocation6 + $0x78] sm:$0xff] %vm736_vm0, %v223_v55 }
 0x12a   :  { %110 = vst.msk [vmem:[#allocation7] sm:$0x1] %vm109_vm4, %v108_v56 }
 0x12b   :  { %344 = shalt.err (!%p341_p12)
}
 0x12c   :  { %s345_s11 = scalar_lea.hbm %s717_s2, 2048 }
 0x12d   :  { %p346_p13 = scmp.ne.s32.totalorder %s717_s2, %s345_s11  ;;  %p349_p0 = scmp.lt.u32.totalorder %s345_s11, %s717_s2 }
 0x12f   :  { %p351_p1 = pnand %p349_p0, %p346_p13 }
 0x131   :  { %354 = shalt.err (!%p351_p1)
}
 0x132   :  { %251 = dma.vmem_to_hbm [thread:$0]  %s246_s5, 2048, %s717_s2, [#allocation5], %s384_s22, %s384_s22, %s385_s23  }
 0x133   :  { %s355_s18 = scalar_lea.vmem %s675_s7, 16  ;;  %s359_s19 = scalar_lea.vmem %s675_s7, 32 }
 0x134   :  { %p356_p2 = scmp.ne.s32.totalorder %s675_s7, %s355_s18  ;;  %p360_p3 = scmp.lt.s32.totalorder %s675_s7, %s675_s7 }
 0x135   :  { %p361_p4 = scmp.lt.s32.totalorder %s359_s19, %s355_s18 }
 0x137   :  { %p362_p5 = por %p361_p4, %p360_p3 }
 0x139   :  { %p363_p6 = pnand %p362_p5, %p356_p2 }
 0x13b   :  { %366 = shalt.err (!%p363_p6)
}
 0x13c   :  { %s367_s24 = scalar_lea.hbm %s718_s3, 16 }
 0x13d   :  { %p368_p7 = scmp.ne.s32.totalorder %s718_s3, %s367_s24  ;;  %p371_p8 = scmp.lt.u32.totalorder %s367_s24, %s718_s3 }
 0x13f   :  { %p373_p9 = pnand %p371_p8, %p368_p7 }
 0x141   :  { %376 = shalt.err (!%p373_p9)
}
 0x142   :  { %261 = dma.vmem_to_hbm [thread:$0]  %s675_s7, 16, %s718_s3, [#allocation8]  }
 0x143   :  { %379 = dma.done.wait [#allocation5], 2048  }
 0x144   :  { %380 = vsyncadd [#allocation5], 4294965248 }
 0x145   :  { %381 = dma.done.wait [#allocation8], 16  }
 0x146   :  { %382 = vsyncadd [#allocation8], 4294967280 }
 0x147   :  { %268 = vsyncpa [#allocation4], 1 }
 0x148   :  { %269 = vsyncpa [#allocation5], 1 }
 0x149   :  { %270 = vsyncpa [#allocation8], 1 }

</bundles_post_ra>
